<compile_context>
chip_gen: v6e
topology: v6e:2x2x1
jax: 0.10.0
libtpu: 0.0.40
codegen_flags: <defaults>
</compile_context>

<pallas_src>
import functools
import math

import jax
import jax.numpy as jnp
from jax.experimental import pallas as pl
from jax.experimental.pallas import tpu as pltpu


def _round_up(x: int, mult: int) -> int:
    return ((x + mult - 1) // mult) * mult


def _mcp_kernel(x_ref, xns_ref, lab_ref, wt_ref, wn_ref, o_ref, *, sm, eps_over_s, tn):
    # x_ref:   (tb, D)   batch tile                         (compute dtype)
    # xns_ref: (tb, 1)   precomputed ||x||_2 / s            (f32, hoisted)
    # lab_ref: (tb, 1)   int32 labels
    # wt_ref:  (D, tn)   weight tile, already transposed    (compute dtype)
    # wn_ref:  (1, tn)   precomputed per-class ||w||_2      (f32, hoisted)
    # o_ref:   (tb, tn)  output tile
    ip = jax.lax.dot_general(
        x_ref[...], wt_ref[...],
        dimension_numbers=(((1,), (0,)), ((), ())),
        preferred_element_type=jnp.float32,
    )  # (tb, tn), MXU with f32 accumulation

    # denom/s = max((||x||/s) * ||w||, eps/s)  ->  ip / denom_s == s * cosine
    denom_s = jnp.maximum(xns_ref[...] * wn_ref[...], eps_over_s)  # (tb, tn)
    scaled = ip / denom_s

    # Margin only at the label class: shift the (tb,1) label column by the
    # tile's class offset instead of adding the offset to the (tb,tn) iota.
    lab_local = lab_ref[...] - pl.program_id(1) * tn               # (tb, 1)
    cls = jax.lax.broadcasted_iota(jnp.int32, scaled.shape, 1)     # (tb, tn)
    out = scaled - jnp.where(cls == lab_local, jnp.float32(sm), jnp.float32(0.0))

    o_ref[...] = out.astype(o_ref.dtype)


def margin_cosine_product(
    inputs, weight, label, *,
    s=30.0, m=0.4, eps=1e-8,
    tb=None, tn=None,
    compute_dtype=jnp.float32,   # set jnp.bfloat16 to halve the weight HBM stream
    out_dtype=jnp.float32,       # set jnp.bfloat16 to halve the output writeback
):
    """inputs: (B, D), weight: (N, D), label: (B,) int -> (B, N) out_dtype."""
    B, D = inputs.shape
    N, D2 = weight.shape
    assert D == D2, "feature dims must match"

    c_bytes = jnp.dtype(compute_dtype).itemsize
    o_bytes = jnp.dtype(out_dtype).itemsize

    # ---- tile selection (lane-dense output tiles, bounded VMEM blocks) ----
    if tn is None:
        tn = min(1024, _round_up(N, 128))
    tn = _round_up(tn, 128)
    if tb is None:
        tb = min(512, _round_up(B, 8))
    tb = _round_up(tb, 8)

    def footprint(tb_, tn_):
        # double-buffered tiles, including VMEM padding of the narrow blocks
        return (
            2 * tb_ * D * c_bytes          # x tile
            + 2 * D * tn_ * c_bytes        # weight^T tile
            + 2 * tb_ * tn_ * o_bytes      # output tile
            + 2 * 2 * tb_ * 128 * 4        # ||x||/s + label (lane-padded)
            + 2 * 8 * tn_ * 4              # ||w|| (sublane-padded)
        )

    budget = 48 * 1024 * 1024
    while footprint(tb, tn) > budget and (tn > 128 or tb > 8):
        if tn >= tb and tn > 128:
            tn = max(128, _round_up(tn // 2, 128))
        elif tb > 8:
            tb = max(8, _round_up(tb // 2, 8))
        else:
            break

    N_pad = _round_up(N, tn)
    B_pad = _round_up(B, tb)

    # ---- one-time layout / dtype / norm prep (amortized over the grid) ----
    x = inputs.astype(compute_dtype)
    w_t = jnp.transpose(weight).astype(compute_dtype)        # (D, N)

    x_f32 = x.astype(jnp.float32)
    w_f32 = w_t.astype(jnp.float32)
    # ||x||/s folds the output scale into the hoisted row norm (saves one
    # (tb, tn) multiply per tile); per-class ||w|| is hoisted as a (1, N) row.
    x_norm_s = jnp.sqrt(jnp.sum(x_f32 * x_f32, axis=1, keepdims=True)) / jnp.float32(s)
    w_norm = jnp.sqrt(jnp.sum(w_f32 * w_f32, axis=0, keepdims=True))  # (1, N)

    lab2d = label.astype(jnp.int32).reshape(B, 1)

    if B_pad != B:
        x = jnp.pad(x, ((0, B_pad - B), (0, 0)))
        x_norm_s = jnp.pad(x_norm_s, ((0, B_pad - B), (0, 0)))
        lab2d = jnp.pad(lab2d, ((0, B_pad - B), (0, 0)))
    if N_pad != N:
        w_t = jnp.pad(w_t, ((0, 0), (0, N_pad - N)))
        w_norm = jnp.pad(w_norm, ((0, 0), (0, N_pad - N)))
        # padded classes: ||w|| == 0 -> denom clamps to eps/s -> output 0 (sliced off)

    vmem_limit = int(min(max(2 * footprint(tb, tn), 32 * 1024 * 1024), 64 * 1024 * 1024))

    kernel = functools.partial(
        _mcp_kernel, sm=float(s) * float(m), eps_over_s=float(eps) / float(s), tn=tn
    )

    grid = (B_pad // tb, N_pad // tn)   # class axis innermost: x tiles stay resident

    out = pl.pallas_call(
        kernel,
        out_shape=jax.ShapeDtypeStruct((B_pad, N_pad), out_dtype),
        grid_spec=pltpu.PrefetchScalarGridSpec(
            num_scalar_prefetch=0,
            grid=grid,
            in_specs=[
                pl.BlockSpec((tb, D), lambda i, j: (i, 0)),   # batch tile of x
                pl.BlockSpec((tb, 1), lambda i, j: (i, 0)),   # hoisted ||x||/s
                pl.BlockSpec((tb, 1), lambda i, j: (i, 0)),   # labels
                pl.BlockSpec((D, tn), lambda i, j: (0, j)),   # weight^T tile
                pl.BlockSpec((1, tn), lambda i, j: (0, j)),   # hoisted ||w||
            ],
            out_specs=pl.BlockSpec((tb, tn), lambda i, j: (i, j)),
        ),
        compiler_params=pltpu.CompilerParams(
            dimension_semantics=("parallel", "parallel"),
            vmem_limit_bytes=vmem_limit,
        ),
    )(x, x_norm_s, lab2d, w_t, w_norm)

    return out[:B, :N]


def _reference(inputs, weight, label, *, s=30.0, m=0.4, eps=1e-8):
    ip = inputs @ weight.T
    w1 = jnp.linalg.norm(inputs, axis=1)
    w2 = jnp.linalg.norm(weight, axis=1)
    cosine = ip / jnp.maximum(jnp.outer(w1, w2), eps)
    one_hot = jax.nn.one_hot(label, weight.shape[0], dtype=cosine.dtype)
    return s * (cosine - one_hot * m)


if __name__ == "__main__":
    key = jax.random.PRNGKey(0)
    k_x, k_w, k_l = jax.random.split(key, 3)

    B = 8
    in_features = 128
    out_features = 256
    s_param, m_param = 30.0, 0.4

    # Deterministic Xavier-uniform init for the weight (out_features, in_features)
    bound = math.sqrt(6.0 / (in_features + out_features))
    weight = jax.random.uniform(
        k_w, (out_features, in_features), jnp.float32, minval=-bound, maxval=bound
    )
    inputs = jax.random.normal(k_x, (B, in_features), jnp.float32)
    label = jax.random.randint(k_l, (B,), 0, out_features, dtype=jnp.int32)

    # 1) default f32 path
    out = margin_cosine_product(inputs, weight, label, s=s_param, m=m_param)
    out = jax.block_until_ready(out)
    ref = _reference(inputs, weight, label, s=s_param, m=m_param)
    assert out.shape == (B, out_features)
    assert jnp.allclose(out, ref, atol=1e-4, rtol=1e-4), "f32 mismatch vs reference"

    # 2) non-tile-aligned shapes exercise the pad / slice path
    B2, N2 = 10, 200
    inputs2 = jax.random.normal(k_x, (B2, in_features), jnp.float32)
    weight2 = jax.random.uniform(
        k_w, (N2, in_features), jnp.float32, minval=-bound, maxval=bound
    )
    label2 = jax.random.randint(k_l, (B2,), 0, N2, dtype=jnp.int32)
    out2 = jax.block_until_ready(
        margin_cosine_product(inputs2, weight2, label2, s=s_param, m=m_param)
    )
    ref2 = _reference(inputs2, weight2, label2, s=s_param, m=m_param)
    assert out2.shape == (B2, N2)
    assert jnp.allclose(out2, ref2, atol=1e-4, rtol=1e-4), "padded-shape mismatch"

    # 3) bf16 streaming path (validated against a reference on the same cast values)
    out_bf16 = jax.block_until_ready(
        margin_cosine_product(
            inputs, weight, label, s=s_param, m=m_param, compute_dtype=jnp.bfloat16
        )
    )
    x_cast = inputs.astype(jnp.bfloat16).astype(jnp.float32)
    w_cast = weight.astype(jnp.bfloat16).astype(jnp.float32)
    ref_bf16 = _reference(x_cast, w_cast, label, s=s_param, m=m_param)
    assert jnp.allclose(out_bf16, ref_bf16, atol=1e-2, rtol=1e-2), "bf16 mismatch"

    print("KERNEL_OK")
</pallas_src>

<mosaic_0001>
module attributes {stable_mosaic.version = 11 : i64} {
  func.func @_mcp_kernel(%arg0: i32, %arg1: i32, %arg2: memref<8x128xf32, #tpu.memory_space<vmem>>, %arg3: memref<8x1xf32, #tpu.memory_space<vmem>>, %arg4: memref<8x1xi32, #tpu.memory_space<vmem>>, %arg5: memref<128x256xf32, #tpu.memory_space<vmem>>, %arg6: memref<1x256xf32, #tpu.memory_space<vmem>>, %arg7: memref<8x256xf32, #tpu.memory_space<vmem>>) attributes {dimension_semantics = [#tpu.dimension_semantics<parallel>, #tpu.dimension_semantics<parallel>], iteration_bounds = array<i64: 1, 1>, scalar_prefetch = 0 : i64, scratch_operands = 0 : i64, tpu.core_type = #tpu.core_type<tc>, window_params = [{transform_indices = @transform_0, window_bounds = array<i64: 8, 128>}, {transform_indices = @transform_1, window_bounds = array<i64: 8, 1>}, {transform_indices = @transform_2, window_bounds = array<i64: 8, 1>}, {transform_indices = @transform_3, window_bounds = array<i64: 128, 256>}, {transform_indices = @transform_4, window_bounds = array<i64: 1, 256>}, {transform_indices = @transform_5, window_bounds = array<i64: 8, 256>}]} {
    %c0 = arith.constant 0 : index
    %c0_0 = arith.constant 0 : index
    %0 = vector.load %arg2[%c0, %c0_0] : memref<8x128xf32, #tpu.memory_space<vmem>>, vector<8x128xf32>
    %c0_1 = arith.constant 0 : index
    %c0_2 = arith.constant 0 : index
    %1 = vector.load %arg5[%c0_1, %c0_2] : memref<128x256xf32, #tpu.memory_space<vmem>>, vector<128x256xf32>
    %cst = arith.constant dense<0.000000e+00> : vector<8x256xf32>
    %2 = tpu.matmul %0, %1, %cst {dimension_numbers = #tpu.dot_dimension_numbers<[1], [0], [0], [1], [0, 0, 1, 1], [], []>} : vector<8x128xf32>, vector<128x256xf32>, vector<8x256xf32> -> vector<8x256xf32>
    %c0_3 = arith.constant 0 : index
    %c0_4 = arith.constant 0 : index
    %3 = vector.load %arg3[%c0_3, %c0_4] : memref<8x1xf32, #tpu.memory_space<vmem>>, vector<8x1xf32>
    %c0_5 = arith.constant 0 : index
    %c0_6 = arith.constant 0 : index
    %4 = vector.load %arg6[%c0_5, %c0_6] : memref<1x256xf32, #tpu.memory_space<vmem>>, vector<1x256xf32>
    %5 = vector.broadcast %3 : vector<8x1xf32> to vector<8x256xf32>
    %6 = vector.broadcast %4 : vector<1x256xf32> to vector<8x256xf32>
    %7 = arith.mulf %5, %6 : vector<8x256xf32>
    %cst_7 = arith.constant 3.33333333E-10 : f32
    %8 = vector.broadcast %cst_7 : f32 to vector<8x256xf32>
    %9 = arith.maximumf %7, %8 : vector<8x256xf32>
    %10 = arith.divf %2, %9 : vector<8x256xf32>
    %c0_8 = arith.constant 0 : index
    %c0_9 = arith.constant 0 : index
    %11 = vector.load %arg4[%c0_8, %c0_9] : memref<8x1xi32, #tpu.memory_space<vmem>>, vector<8x1xi32>
    %c256_i32 = arith.constant 256 : i32
    %12 = arith.muli %arg1, %c256_i32 : i32
    %13 = vector.broadcast %12 : i32 to vector<8x1xi32>
    %14 = arith.subi %11, %13 : vector<8x1xi32>
    %15 = tpu.iota {dimensions = array<i32: 1>} : vector<8x256xi32>
    %16 = vector.broadcast %14 : vector<8x1xi32> to vector<8x256xi32>
    %17 = arith.cmpi eq, %15, %16 : vector<8x256xi32>
    %cst_10 = arith.constant 1.200000e+01 : f32
    %cst_11 = arith.constant 0.000000e+00 : f32
    %18 = vector.broadcast %cst_10 : f32 to vector<8x256xf32>
    %19 = vector.broadcast %cst_11 : f32 to vector<8x256xf32>
    %20 = arith.select %17, %18, %19 : vector<8x256xi1>, vector<8x256xf32>
    %21 = arith.subf %10, %20 : vector<8x256xf32>
    %c0_12 = arith.constant 0 : index
    %c0_13 = arith.constant 0 : index
    %22 = vector.load %arg7[%c0_12, %c0_13] : memref<8x256xf32, #tpu.memory_space<vmem>>, vector<8x256xf32>
    tpu.vector_store %arg7[%c0_12, %c0_13], %21 {strides = array<i32>} : memref<8x256xf32, #tpu.memory_space<vmem>>, vector<8x256xf32>,
    return
  }
  func.func @transform_0(%arg0: i32, %arg1: i32) -> (i32, i32) {
    %c0_i32 = arith.constant 0 : i32
    %c0_i32_0 = arith.constant 0 : i32
    return %arg0, %c0_i32 : i32, i32
  }
  func.func @transform_1(%arg0: i32, %arg1: i32) -> (i32, i32) {
    %c0_i32 = arith.constant 0 : i32
    %c0_i32_0 = arith.constant 0 : i32
    return %arg0, %c0_i32 : i32, i32
  }
  func.func @transform_2(%arg0: i32, %arg1: i32) -> (i32, i32) {
    %c0_i32 = arith.constant 0 : i32
    %c0_i32_0 = arith.constant 0 : i32
    return %arg0, %c0_i32 : i32, i32
  }
  func.func @transform_3(%arg0: i32, %arg1: i32) -> (i32, i32) {
    %c0_i32 = arith.constant 0 : i32
    %c0_i32_0 = arith.constant 0 : i32
    return %c0_i32, %arg1 : i32, i32
  }
  func.func @transform_4(%arg0: i32, %arg1: i32) -> (i32, i32) {
    %c0_i32 = arith.constant 0 : i32
    %c0_i32_0 = arith.constant 0 : i32
    return %c0_i32, %arg1 : i32, i32
  }
  func.func @transform_5(%arg0: i32, %arg1: i32) -> (i32, i32) {
    %c0_i32 = arith.constant 0 : i32
    return %arg0, %arg1 : i32, i32
  }
}

</mosaic_0001>

<bundles_post_ra>
// kernel: tpu_custom_call.1
= control target key start
LH: loop header
LB: loop body
LE: loop exit
PB: predicated region body
PF: predicated region fallthrough
CT: control target
= control target key end

     0   :  { %10 = vsyncpa [#allocation3], 0  ;;  %s310_s0 = inlined_call_operand.vmem [shape: f32[8,128], index: 0, kind: input, shape index: {}]   ;;  %s311_s1 = inlined_call_operand.vmem [shape: f32[8,1], index: 1, kind: input, shape index: {}]   ;;  %s312_s2 = inlined_call_operand.vmem [shape: s32[8,1], index: 2, kind: input, shape index: {}]   ;;  %s313_s3 = inlined_call_operand.hbm [shape: f32[128,256], index: 3, kind: input, shape index: {}]   ;;  %s314_s4 = inlined_call_operand.vmem [shape: f32[1,256], index: 4, kind: input, shape index: {}]   ;;  %s315_s5 = inlined_call_operand.hbm [shape: f32[8,256], index: 5, kind: output, shape index: {}]  }
   0x1   :  { %11 = vsyncpa [#allocation4], 0  ;;  %s253_s18 = smov [#allocation2]  }
   0x2   :  { %s23_s19 = sshll.u32 %s253_s18, 4  ;;  %s24_s19 = int_to_ptr.vmem [resolvable:$true] %s23_s19 }
   0x3   :  { %s217_s20 = scalar_lea.vmem %s24_s19, 4096  ;;  %p222_p1 = scmp.lt.s32.totalorder %s24_s19, %s24_s19 }
   0x4   :  { %p218_p0 = scmp.ne.s32.totalorder %s24_s19, %s217_s20  ;;  %p223_p2 = scmp.lt.s32.totalorder %s217_s20, %s217_s20 }
   0x6   :  { %p224_p3 = por %p223_p2, %p222_p1 }
   0x8   :  { %p225_p4 = pnand %p224_p3, %p218_p0 }
   0xa   :  { %228 = shalt.err (!%p225_p4)
}
   0xb   :  { %s254_s21 = smov 256   ;;  %s255_s22 = smov 16  }
   0xc   :  { %29 = dma.hbm_to_vmem [thread:$0]  %s313_s3, 4096, %s24_s19, [#allocation3], %s254_s21, %s254_s21, %s255_s22  }
   0xd   :  { %249 = dma.done.wait [#allocation3], 4096  }
   0xe   :  { %250 = vsyncadd [#allocation3], 4294963200  ;;  %v256_v0 = vmov 0.0   ;;  %v257_v1 = vmov 0   ;;  %v67_v2 = vld [vmem:[#allocation2 + $0xf8] sm:$0xff]  ;;  %v66_v3 = vld [vmem:[#allocation2 + $0xf0] sm:$0xff]  ;;  %v147_v37 = vlaneseq }
   0xf   :  { %132 = vmatprep.mubr.f32.mxu0 %v256_v0  ;;  %204 = vset.pattern.permute.xlu0 %v257_v1  ;;  %v65_v4 = vld [vmem:[#allocation2 + $0xe8] sm:$0xff]  ;;  %v64_v5 = vld [vmem:[#allocation2 + $0xe0] sm:$0xff]  ;;  %v63_v6 = vld [vmem:[#allocation2 + $0xd8] sm:$0xff] }
  0x10   :  { %68 = vmatprep.subr.mxu0 %v67_v2  ;;  %v62_v7 = vld [vmem:[#allocation2 + $0xd0] sm:$0xff]  ;;  %v61_v8 = vld [vmem:[#allocation2 + $0xc8] sm:$0xff]  ;;  %v60_v9 = vld [vmem:[#allocation2 + $0xc0] sm:$0xff]  ;;  %v148_v38 = vshrl.u32 %v147_v37, 7  ;;  %v170_v49 = vand.u32 127, %v147_v37 }
  0x11   :  { %69 = vmatpush1.msra.mxu0 %v66_v3  ;;  %v59_v10 = vld [vmem:[#allocation2 + $0xb8] sm:$0xff]  ;;  %v58_v11 = vld [vmem:[#allocation2 + $0xb0] sm:$0xff]  ;;  %v57_v12 = vld [vmem:[#allocation2 + $0xa8] sm:$0xff] }
  0x12   :  { %70 = vmatprep.subr.mxu0 %v65_v4  ;;  %v56_v13 = vld [vmem:[#allocation2 + $0xa0] sm:$0xff]  ;;  %v55_v14 = vld [vmem:[#allocation2 + $0x98] sm:$0xff]  ;;  %v54_v15 = vld [vmem:[#allocation2 + $0x90] sm:$0xff]  ;;  %v149_v39 = vsub.s32 0, %v148_v38  ;;  %v153_v41 = vsub.s32 1, %v148_v38  ;;  %v171_v51 = vadd.s32 128, %v170_v49 }
  0x13   :  { %71 = vmatpush1.msra.mxu0 %v64_v5  ;;  %v139_v16 = vld [vmem:[%s311_s1] sm:$0xff]  ;;  %v53_v17 = vld [vmem:[#allocation2 + $0x88] sm:$0xff]  ;;  %v51_v20 = vld [vmem:[#allocation2 + $0x78] sm:$0xff] }
  0x14   :  { %72 = vmatprep.subr.mxu0 %v63_v6  ;;  %143 = vperm.xlu0 %204, %v139_v16   ;;  %v52_v18 = vld [vmem:[#allocation2 + $0x80] sm:$0xff]  ;;  %v50_v21 = vld [vmem:[#allocation2 + $0x70] sm:$0xff]  ;;  %v49_v22 = vld [vmem:[#allocation2 + $0x68] sm:$0xff] }
  0x15   :  { %73 = vmatpush1.msra.mxu0 %v62_v7  ;;  %v165_v19 = vld [vmem:[%s312_s2] sm:$0xff]  ;;  %v47_v24 = vld [vmem:[#allocation2 + $0x58] sm:$0xff]  ;;  %v46_v25 = vld [vmem:[#allocation2 + $0x50] sm:$0xff] }
  0x16   :  { %74 = vmatprep.subr.mxu0 %v61_v8  ;;  %v48_v23 = vld [vmem:[#allocation2 + $0x60] sm:$0xff]  ;;  %v45_v26 = vld [vmem:[#allocation2 + $0x48] sm:$0xff]  ;;  %v43_v28 = vld [vmem:[#allocation2 + $0x38] sm:$0xff] }
  0x17   :  { %75 = vmatpush1.msra.mxu0 %v60_v9  ;;  %v44_v27 = vld [vmem:[#allocation2 + $0x40] sm:$0xff]  ;;  %v42_v29 = vld [vmem:[#allocation2 + $0x30] sm:$0xff]  ;;  %v41_v30 = vld [vmem:[#allocation2 + $0x28] sm:$0xff] }
  0x18   :  { %76 = vmatprep.subr.mxu0 %v59_v10  ;;  %173 = vperm.xlu0 %204, %v165_v19   ;;  %v40_v31 = vld [vmem:[#allocation2 + $0x20] sm:$0xff]  ;;  %v39_v32 = vld [vmem:[#allocation2 + $0x18] sm:$0xff]  ;;  %v38_v33 = vld [vmem:[#allocation2 + $0x10] sm:$0xff] }
  0x19   :  { %77 = vmatpush1.msra.mxu0 %v58_v11  ;;  %v37_v34 = vld [vmem:[#allocation2 + $0x8] sm:$0xff]  ;;  %v36_v35 = vld [vmem:[#allocation2] sm:$0xff] }
  0x1a   :  { %78 = vmatprep.subr.mxu0 %v57_v12  ;;  %v35_v36 = vld [vmem:[%s310_s0] sm:$0xff]  ;;  %s258_s0 = smov [#allocation5]  }
  0x1b   :  { %79 = vmatpush1.msra.mxu0 %v56_v13  ;;  %v140_v40 = vld [vmem:[%s314_s4] sm:$0x3]  ;;  %s189_s4 = sshll.u32 %s258_s0, 4  ;;  %s190_s4 = int_to_ptr.vmem [resolvable:$true] %s189_s4 }
  0x1c   :  { %80 = vmatprep.subr.mxu0 %v55_v14  ;;  %v150_v42 = vrot.slane %v140_v40, %v149_v39  ;;  %v154_v43 = vrot.slane %v140_v40, %v153_v41  ;;  %s229_s30 = scalar_lea.vmem %s190_s4, 256  ;;  %p234_p6 = scmp.lt.s32.totalorder %s190_s4, %s190_s4 }
  0x1d   :  { %81 = vmatpush1.msra.mxu0 %v54_v15  ;;  %p230_p5 = scmp.ne.s32.totalorder %s190_s4, %s229_s30  ;;  %p235_p7 = scmp.lt.s32.totalorder %s229_s30, %s229_s30 }
  0x1e   :  { %82 = vmatprep.subr.mxu0 %v53_v17 }
  0x1f   :  { %83 = vmatpush1.msra.mxu0 %v52_v18  ;;  %p236_p8 = por %p235_p7, %p234_p6 }
  0x20   :  { %84 = vmatprep.subr.mxu0 %v51_v20 }
  0x21   :  { %85 = vmatpush1.msra.mxu0 %v50_v21  ;;  %p237_p9 = pnand %p236_p8, %p230_p5 }
  0x22   :  { %86 = vmatprep.subr.mxu0 %v49_v22 }
  0x23   :  { %87 = vmatpush1.msra.mxu0 %v48_v23 }
  0x24   :  { %88 = vmatprep.subr.mxu0 %v47_v24 }
  0x25   :  { %89 = vmatpush1.msra.mxu0 %v46_v25 }
  0x26   :  { %90 = vmatprep.subr.mxu0 %v45_v26 }
  0x27   :  { %91 = vmatpush1.msra.mxu0 %v44_v27 }
  0x28   :  { %92 = vmatprep.subr.mxu0 %v43_v28 }
  0x29   :  { %93 = vmatpush1.msra.mxu0 %v42_v29 }
  0x2a   :  { %94 = vmatprep.subr.mxu0 %v41_v30 }
  0x2b   :  { %95 = vmatpush1.msra.mxu0 %v40_v31 }
  0x2c   :  { %96 = vmatprep.subr.mxu0 %v39_v32 }
  0x2d   :  { %97 = vmatpush1.msra.mxu0 %v38_v33 }
  0x2e   :  { %98 = vmatprep.subr.mxu0 %v37_v34 }
  0x2f   :  { %99 = vmatpush1.msra.mxu0 %v36_v35 }
  0x30   :  { %133 = vmatmul.mubr.f32.vlgmr.msra.gmra.mxu0 %v35_v36 }
  0x8f   :  { %v144_v44 = vpop.permute.xlu0 %143 }
  0x90   :  { %v157_v45 = vmul.f32 %v150_v42, %v144_v44  ;;  %v158_v46 = vmul.f32 %v154_v43, %v144_v44 }
  0x92   :  { %v159_v47 = vmax.f32 %v157_v45, 3.3333333e-10  ;;  %v160_v48 = vmax.f32 %v158_v46, 3.3333333e-10 }
  0x93   :  { %v174_v50 = vpop.permute.xlu0 %173 }
  0x94   :  { %205 = vrcp.f32 %v159_v47  ;;  %vm175_vm0 = vcmp.eq.s32.totalorder %v170_v49, %v174_v50  ;;  %vm176_vm1 = vcmp.eq.s32.totalorder %v171_v51, %v174_v50 }
  0x95   :  { %207 = vrcp.f32 %v160_v48  ;;  %v177_v56 = vsel %vm175_vm0, 12.0, %v256_v0  ;;  %v178_v60 = vsel %vm176_vm1, 12.0, %v256_v0 }
  0xa1   :  { %v206_v52 = vpop.eup %205 }
  0xa2   :  { %v208_v53 = vpop.eup %207 }
  0xf0   :  { %v134_v54 = vpop.f32.mrf.mxu0 }
  0xf1   :  { %v162_v55 = vmul.f32 %v206_v52, %v134_v54 }
  0xf2   :  { %v136_v57 = vpop.f32.mrf.mxu0 }
  0xf3   :  { %v179_v58 = vsub.f32 %v162_v55, %v177_v56  ;;  %v164_v59 = vmul.f32 %v208_v53, %v136_v57 }
  0xf5   :  { %181 = vst [vmem:[#allocation5] sm:$0xff] %v179_v58  ;;  %v180_v61 = vsub.f32 %v164_v59, %v178_v60 }
  0xf7   :  { %182 = vst [vmem:[#allocation5 + $0x8] sm:$0xff] %v180_v61 }
  0xf8   :  { %240 = shalt.err (!%p237_p9)
}
  0xf9   :  { %192 = dma.vmem_to_hbm [thread:$0]  %s190_s4, 256, %s315_s5, [#allocation4]  }
  0xfa   :  { %251 = dma.done.wait [#allocation4], 256  }
  0xfb   :  { %252 = vsyncadd [#allocation4], 4294967040 }
  0xfc   :  { %196 = vsyncpa [#allocation3], 1 }
  0xfd   :  { %197 = vsyncpa [#allocation4], 1 }

</bundles_post_ra>
